<compile_context>
chip_gen: v7x
topology: tpu7x:2x2x1
jax: 0.10.0
libtpu: 0.0.40
codegen_flags: <defaults>
</compile_context>

<pallas_src>
import jax
import jax.numpy as jnp
from jax.experimental import pallas as pl
from jax.experimental.pallas import tpu as pltpu


def _linear_kernel(x_ref, w_ref, b_ref, o_ref):
    k = pl.program_id(2)

    @pl.when(k == 0)
    def _():
        # Fold the bias into the accumulator init — no epilogue pass needed.
        o_ref[...] = jnp.broadcast_to(b_ref[...], o_ref.shape).astype(o_ref.dtype)

    # Hot loop: MXU matmul accumulated directly into the resident output tile
    # (output dtype is f32, and the out BlockSpec keeps this block resident
    # across the whole k axis since its index is independent of k).
    o_ref[...] += jnp.dot(
        x_ref[...], w_ref[...], preferred_element_type=jnp.float32
    )


def _round_up(x, m):
    return (x + m - 1) // m * m


def _pick_tile(padded_dim, target, align):
    """Tile size (multiple of `align`) + final padded dim, minimizing padding."""
    if padded_dim <= target:
        return padded_dim, padded_dim            # single block, no extra padding
    return target, _round_up(padded_dim, target)  # waste bounded by one tile


def my_linear_forward(x, W, b, *, tm=512, tn=512, tk=512, use_bf16=False):
    """output = x @ W + b via a tiled, pipelined Pallas kernel.

    x: (M, K) f32, W: (K, N) f32, b: (N,) f32 -> (M, N) f32.
    """
    M, K = x.shape
    K2, N = W.shape
    assert K == K2, f"inner dims mismatch: {K} vs {K2}"
    assert b.shape == (N,)

    # Minimal layout padding first (8 sublanes / 128 lanes), then tiles.
    M8, N128, K128 = _round_up(M, 8), _round_up(N, 128), _round_up(K, 128)
    tm, Mp = _pick_tile(M8, tm, 8)
    tn, Np = _pick_tile(N128, tn, 128)
    tk, Kp = _pick_tile(K128, tk, 128)

    # Keep both v7x TensorCores busy: a big problem that collapsed to a single
    # (1,1,K) grid gets its larger parallel axis split in two.  Harmless on
    # single-TC v5e/v6e.
    if Mp // tm == 1 and Np // tn == 1 and Mp * Np >= 512 * 512:
        if Np >= Mp:
            tn = _round_up(pl.cdiv(Np, 2), 128)
            Np = 2 * tn
        else:
            tm = _round_up(pl.cdiv(Mp, 2), 8)
            Mp = 2 * tm

    in_dtype = jnp.bfloat16 if use_bf16 else x.dtype
    xp = x.astype(in_dtype)
    Wp = W.astype(in_dtype)
    if Mp != M or Kp != K:
        xp = jnp.pad(xp, ((0, Mp - M), (0, Kp - K)))
    if Kp != K or Np != N:
        Wp = jnp.pad(Wp, ((0, Kp - K), (0, Np - N)))
    bp = (b if Np == N else jnp.pad(b, (0, Np - N))).reshape(1, Np).astype(jnp.float32)

    grid = (Mp // tm, Np // tn, Kp // tk)

    # Advisory cost: account for re-streaming x (Np/tn times) and W (Mp/tm times).
    elt = 2 if use_bf16 else 4
    cost = pl.CostEstimate(
        flops=2 * Mp * Np * Kp,
        transcendentals=0,
        bytes_accessed=(
            elt * (Mp * Kp * (Np // tn) + Kp * Np * (Mp // tm))
            + 4 * (Mp * Np + Np)
        ),
    )

    out_p = pl.pallas_call(
        _linear_kernel,
        out_shape=jax.ShapeDtypeStruct((Mp, Np), jnp.float32),
        grid=grid,
        in_specs=[
            pl.BlockSpec((tm, tk), lambda i, j, k: (i, k)),   # x tile
            pl.BlockSpec((tk, tn), lambda i, j, k: (k, j)),   # W tile
            pl.BlockSpec((1, tn), lambda i, j, k: (0, j)),    # bias tile
        ],
        out_specs=pl.BlockSpec((tm, tn), lambda i, j, k: (i, j)),
        compiler_params=pltpu.CompilerParams(
            dimension_semantics=("parallel", "parallel", "arbitrary"),
            vmem_limit_bytes=48 * 1024 * 1024,   # safe on v7x (64 MiB phys.)
        ),
        cost_estimate=cost,
    )(xp, Wp, bp)

    if Mp == M and Np == N:
        return out_p
    return out_p[:M, :N]


if __name__ == "__main__":
    key = jax.random.PRNGKey(0)

    # 1) Small shapes consistent with the module: batch=8, in=32, out=16
    #    (collapses to a single-block, latency-optimal kernel).
    batch, input_dim, output_dim = 8, 32, 16
    kx, kw, kb = jax.random.split(key, 3)
    x = jax.random.normal(kx, (batch, input_dim), dtype=jnp.float32)
    W = jax.random.normal(kw, (input_dim, output_dim), dtype=jnp.float32)
    b = jax.random.normal(kb, (output_dim,), dtype=jnp.float32)

    fwd = jax.jit(my_linear_forward)
    out = fwd(x, W, b)
    jax.block_until_ready(out)
    ref = x @ W + b
    assert out.shape == (batch, output_dim)
    assert jnp.allclose(out, ref, atol=1e-5, rtol=1e-5)

    # 2) Ragged, multi-block shapes to exercise the tiled K-accumulation path
    #    (small tiles forced so the 3-D grid is actually used).
    M2, K2, N2 = 200, 300, 200
    kx2, kw2, kb2 = jax.random.split(jax.random.PRNGKey(1), 3)
    x2 = jax.random.normal(kx2, (M2, K2), dtype=jnp.float32)
    W2 = jax.random.normal(kw2, (K2, N2), dtype=jnp.float32)
    b2 = jax.random.normal(kb2, (N2,), dtype=jnp.float32)

    fwd_tiled = jax.jit(
        lambda a, w, c: my_linear_forward(a, w, c, tm=128, tn=128, tk=128)
    )
    out2 = fwd_tiled(x2, W2, b2)
    jax.block_until_ready(out2)
    ref2 = x2 @ W2 + b2
    assert out2.shape == (M2, N2)
    assert jnp.allclose(out2, ref2, atol=1e-3, rtol=1e-3)

    print("KERNEL_OK")
</pallas_src>

<mosaic_0001>
module attributes {stable_mosaic.version = 11 : i64} {
  func.func @_linear_kernel(%arg0: i32, %arg1: i32, %arg2: i32, %arg3: memref<8x128xf32, #tpu.memory_space<vmem>>, %arg4: memref<128x128xf32, #tpu.memory_space<vmem>>, %arg5: memref<1x128xf32, #tpu.memory_space<vmem>>, %arg6: memref<8x128xf32, #tpu.memory_space<vmem>>) attributes {dimension_semantics = [#tpu.dimension_semantics<parallel>, #tpu.dimension_semantics<parallel>, #tpu.dimension_semantics<arbitrary>], iteration_bounds = array<i64: 1, 1, 1>, scalar_prefetch = 0 : i64, scratch_operands = 0 : i64, tpu.core_type = #tpu.core_type<tc>, window_params = [{transform_indices = @transform_0, window_bounds = array<i64: 8, 128>}, {transform_indices = @transform_1, window_bounds = array<i64: 128, 128>}, {transform_indices = @transform_2, window_bounds = array<i64: 1, 128>}, {transform_indices = @transform_3, window_bounds = array<i64: 8, 128>}]} {
    %c0_i32 = arith.constant 0 : i32
    %0 = arith.cmpi eq, %arg2, %c0_i32 : i32
    %1 = arith.extui %0 : i1 to i32
    %c0_i32_0 = arith.constant 0 : i32
    %2 = arith.cmpi ne, %1, %c0_i32_0 : i32
    scf.if %2 {
      %c0_8 = arith.constant 0 : index
      %c0_9 = arith.constant 0 : index
      %9 = vector.load %arg5[%c0_8, %c0_9] : memref<1x128xf32, #tpu.memory_space<vmem>>, vector<1x128xf32>
      %10 = vector.shape_cast %9 : vector<1x128xf32> to vector<1x128xf32>
      %11 = vector.broadcast %10 : vector<1x128xf32> to vector<8x128xf32>
      %c0_10 = arith.constant 0 : index
      %c0_11 = arith.constant 0 : index
      %12 = vector.load %arg6[%c0_10, %c0_11] : memref<8x128xf32, #tpu.memory_space<vmem>>, vector<8x128xf32>
      tpu.vector_store %arg6[%c0_10, %c0_11], %11 {strides = array<i32>} : memref<8x128xf32, #tpu.memory_space<vmem>>, vector<8x128xf32>,
    } else {
    }
    %c0 = arith.constant 0 : index
    %c0_1 = arith.constant 0 : index
    %3 = vector.load %arg6[%c0, %c0_1] : memref<8x128xf32, #tpu.memory_space<vmem>>, vector<8x128xf32>
    %c0_2 = arith.constant 0 : index
    %c0_3 = arith.constant 0 : index
    %4 = vector.load %arg3[%c0_2, %c0_3] : memref<8x128xf32, #tpu.memory_space<vmem>>, vector<8x128xf32>
    %c0_4 = arith.constant 0 : index
    %c0_5 = arith.constant 0 : index
    %5 = vector.load %arg4[%c0_4, %c0_5] : memref<128x128xf32, #tpu.memory_space<vmem>>, vector<128x128xf32>
    %cst = arith.constant dense<0.000000e+00> : vector<8x128xf32>
    %6 = tpu.matmul %4, %5, %cst {dimension_numbers = #tpu.dot_dimension_numbers<[1], [0], [0], [1], [0, 0, 1, 1], [], []>} : vector<8x128xf32>, vector<128x128xf32>, vector<8x128xf32> -> vector<8x128xf32>
    %7 = arith.addf %3, %6 : vector<8x128xf32>
    %c0_6 = arith.constant 0 : index
    %c0_7 = arith.constant 0 : index
    %8 = vector.load %arg6[%c0_6, %c0_7] : memref<8x128xf32, #tpu.memory_space<vmem>>, vector<8x128xf32>
    tpu.vector_store %arg6[%c0_6, %c0_7], %7 {strides = array<i32>} : memref<8x128xf32, #tpu.memory_space<vmem>>, vector<8x128xf32>,
    return
  }
  func.func @transform_0(%arg0: i32, %arg1: i32, %arg2: i32) -> (i32, i32) {
    %c0_i32 = arith.constant 0 : i32
    return %arg0, %arg2 : i32, i32
  }
  func.func @transform_1(%arg0: i32, %arg1: i32, %arg2: i32) -> (i32, i32) {
    %c0_i32 = arith.constant 0 : i32
    return %arg2, %arg1 : i32, i32
  }
  func.func @transform_2(%arg0: i32, %arg1: i32, %arg2: i32) -> (i32, i32) {
    %c0_i32 = arith.constant 0 : i32
    %c0_i32_0 = arith.constant 0 : i32
    return %c0_i32, %arg1 : i32, i32
  }
  func.func @transform_3(%arg0: i32, %arg1: i32, %arg2: i32) -> (i32, i32) {
    %c0_i32 = arith.constant 0 : i32
    return %arg0, %arg1 : i32, i32
  }
}

</mosaic_0001>

<bundles_post_ra>
// kernel: my_linear_forward.1
= control target key start
LH: loop header
LB: loop body
LE: loop exit
PB: predicated region body
PF: predicated region fallthrough
CT: control target
= control target key end

     0   :  { %v236_v3 = vmov 0.0|0.0   ;;  %vm237_vm0 = vmmov 0   ;;  %v238_v6 = vmov 0.0   ;;  %s326_s0 = inlined_call_operand.vmem [shape: f32[8,128], index: 0, kind: input, shape index: {}]   ;;  %s327_s1 = inlined_call_operand.vmem [shape: f32[128,128], index: 1, kind: input, shape index: {}]   ;;  %s328_s2 = inlined_call_operand.vmem [shape: f32[1,128], index: 2, kind: input, shape index: {}]   ;;  %s329_s3 = inlined_call_operand.hbm [shape: f32[8,128], index: 3, kind: output, shape index: {}]  }
   0x1   :  { %v29_v0 = vld [vmem:[%s327_s1] sm:$0xff]  ;;  %v30_v1 = vld [vmem:[%s327_s1 + $0x8] sm:$0xff]  ;;  %v31_v2 = vld [vmem:[%s327_s1 + $0x10] sm:$0xff]  ;;  %184 = vmatprep.subr.bf16.mxu0 %v236_v3  ;;  %181 = vmatprep.mubr.msk.f32.mxu0 %vm237_vm0, %v238_v6 }
   0x2   :  { %v185_v4 = vpack.c.bf16 %v30_v1, %v29_v0  ;;  %v32_v5 = vld [vmem:[%s327_s1 + $0x18] sm:$0xff]  ;;  %v33_v8 = vld [vmem:[%s327_s1 + $0x20] sm:$0xff]  ;;  %v34_v9 = vld [vmem:[%s327_s1 + $0x28] sm:$0xff] }
   0x3   :  { %v188_v7 = vpack.c.bf16 %v32_v5, %v31_v2 }
   0x4   :  { %186 = vmatpush3.bf16.msra.mxu0 %v185_v4 }
   0x5   :  { %187 = vmatprep.subr.bf16.mxu0 %v236_v3 }
   0x6   :  { %8 = vsyncpa [#allocation3], 0  ;;  %v191_v10 = vpack.c.bf16 %v34_v9, %v33_v8  ;;  %v35_v11 = vld [vmem:[%s327_s1 + $0x30] sm:$0xff]  ;;  %v36_v12 = vld [vmem:[%s327_s1 + $0x38] sm:$0xff]  ;;  %s239_s21 = smov [#allocation2]  }
   0x7   :  { %v194_v13 = vpack.c.bf16 %v36_v12, %v35_v11  ;;  %v37_v14 = vld [vmem:[%s327_s1 + $0x40] sm:$0xff]  ;;  %v38_v15 = vld [vmem:[%s327_s1 + $0x48] sm:$0xff]  ;;  %v39_v17 = vld [vmem:[%s327_s1 + $0x50] sm:$0xff]  ;;  %s123_s22 = sshll.u32 %s239_s21, 4  ;;  %s124_s22 = int_to_ptr.vmem [resolvable:$true] %s123_s22 }
   0x8   :  { %189 = vmatpush3.bf16.msra.mxu0 %v188_v7  ;;  %v197_v16 = vpack.c.bf16 %v38_v15, %v37_v14  ;;  %v40_v18 = vld [vmem:[%s327_s1 + $0x58] sm:$0xff]  ;;  %v41_v20 = vld [vmem:[%s327_s1 + $0x60] sm:$0xff]  ;;  %v42_v21 = vld [vmem:[%s327_s1 + $0x68] sm:$0xff]  ;;  %p217_p1 = scmp.lt.s32.totalorder %s124_s22, %s124_s22 }
   0x9   :  { %190 = vmatprep.subr.bf16.mxu0 %v236_v3  ;;  %v200_v19 = vpack.c.bf16 %v40_v18, %v39_v17  ;;  %v203_v22 = vpack.c.bf16 %v42_v21, %v41_v20  ;;  %v43_v23 = vld [vmem:[%s327_s1 + $0x70] sm:$0xff]  ;;  %v44_v24 = vld [vmem:[%s327_s1 + $0x78] sm:$0xff]  ;;  %v28_v26 = vld [vmem:[%s326_s0] sm:$0xff]  ;;  %s212_s1 = scalar_lea.vmem %s124_s22, 128 }
   0xa   :  { %v206_v25 = vpack.c.bf16 %v44_v24, %v43_v23  ;;  %v131_v27 = vld [vmem:[%s328_s2] ss:$0 sm:$0xff]  ;;  %p213_p0 = scmp.ne.s32.totalorder %s124_s22, %s212_s1  ;;  %p218_p2 = scmp.lt.s32.totalorder %s212_s1, %s212_s1 }
   0xc   :  { %192 = vmatpush3.bf16.msra.mxu0 %v191_v10  ;;  %p219_p3 = por %p218_p2, %p217_p1 }
   0xd   :  { %193 = vmatprep.subr.bf16.mxu0 %v236_v3 }
   0xe   :  { %p220_p4 = pnand %p219_p3, %p213_p0 }
  0x10   :  { %195 = vmatpush3.bf16.msra.mxu0 %v194_v13 }
  0x11   :  { %196 = vmatprep.subr.bf16.mxu0 %v236_v3 }
  0x14   :  { %198 = vmatpush3.bf16.msra.mxu0 %v197_v16 }
  0x15   :  { %199 = vmatprep.subr.bf16.mxu0 %v236_v3 }
  0x18   :  { %201 = vmatpush3.bf16.msra.mxu0 %v200_v19 }
  0x19   :  { %202 = vmatprep.subr.bf16.mxu0 %v236_v3 }
  0x1c   :  { %204 = vmatpush3.bf16.msra.mxu0 %v203_v22 }
  0x1d   :  { %205 = vmatprep.subr.bf16.mxu0 %v236_v3 }
  0x20   :  { %207 = vmatpush3.bf16.msra.mxu0 %v206_v25 }
  0x23   :  { %182 = vmatmul.mubr.f32.vlgmr.msra.gmra.mrb[0].mxu0 %v28_v26 }
  0xf6   :  { %v111_v28 = vpop.f32.mrb[0].mxu0 }
  0xf7   :  { %v115_v29 = vadd.f32 %v131_v27, %v111_v28  ;;  %v183_v30 = vpop.f32.mrb[1].mxu0 }
  0xf9   :  { %116 = vst [vmem:[#allocation2] sm:$0xff] %v115_v29 }
  0xfa   :  { %223 = shalt.err (!%p220_p4)
}
  0xfb   :  { %s224_s24 = scalar_lea.hbm %s329_s3, 128 }
  0xfc   :  { %p225_p5 = scmp.ne.s32.totalorder %s329_s3, %s224_s24  ;;  %p228_p6 = scmp.lt.u32.totalorder %s224_s24, %s329_s3 }
  0xfe   :  { %p230_p7 = pnand %p228_p6, %p225_p5 }
 0x100   :  { %233 = shalt.err (!%p230_p7)
}
 0x101   :  { %126 = dma.vmem_to_hbm [thread:$0]  %s124_s22, 128, %s329_s3, [#allocation3]  }
 0x102   :  { %234 = dma.done.wait [#allocation3], 128  }
 0x103   :  { %235 = vsyncadd [#allocation3], 4294967168 }
 0x104   :  { %130 = vsyncpa [#allocation3], 1 }

</bundles_post_ra>
